<compile_context>
chip_gen: v7x
topology: tpu7x:2x2x1
jax: 0.10.0
libtpu: 0.0.40
codegen_flags: <defaults>
</compile_context>

<pallas_src>
import functools
import math

import numpy as np
import jax
import jax.numpy as jnp
from jax.experimental import pallas as pl
from jax.experimental.pallas import tpu as pltpu


def _cdiv(a, b):
    return (a + b - 1) // b


def _round_up(a, b):
    return _cdiv(a, b) * b


# --------------------------------------------------------------------------
# Stage 1: per-point z-indexed 1x1 conv   sf[:, n] = kernel[z[n]].T @ feat[:, n]
# --------------------------------------------------------------------------
def _point_conv_kernel(feat_ref, kern_ref, bias_ref, zidx_ref, sf_ref, *, n_kernels):
    """feat_ref [Cin, tile_n], kern_ref [n_kernels, Cout, Cin] (resident),
    bias_ref [Cout, 1] f32 (resident), zidx_ref [1, tile_n] i32,
    sf_ref [Cout, tile_n] f32."""
    feat = feat_ref[...]                                    # [Cin, tile_n]
    zrow = zidx_ref[...]                                    # [1, tile_n]
    cout = kern_ref.shape[1]
    tn = feat.shape[1]
    acc = jnp.zeros((cout, tn), jnp.float32)
    for k in range(n_kernels):                              # static unroll (small)
        mk = (zrow == k).astype(feat.dtype)                 # sublane-broadcast mask
        acc = acc + jnp.dot(kern_ref[k], feat * mk,
                            preferred_element_type=jnp.float32)
    # Bias added per point BEFORE the scatter (matches the module: empty BEV
    # cells stay 0, cells with multiple points accumulate bias per point).
    sf_ref[...] = acc + bias_ref[...]


def _point_conv(feat_t, kern3, bias_col, zidx_row, *, tile_n, n_kernels):
    cin, n_pad = feat_t.shape
    cout = kern3.shape[1]
    num_n = n_pad // tile_n
    return pl.pallas_call(
        functools.partial(_point_conv_kernel, n_kernels=n_kernels),
        grid=(num_n,),
        out_shape=jax.ShapeDtypeStruct((cout, n_pad), jnp.float32),
        in_specs=[
            pl.BlockSpec((cin, tile_n), lambda n: (0, n)),
            pl.BlockSpec((n_kernels, cout, cin), lambda n: (0, 0, 0)),
            pl.BlockSpec((cout, 1), lambda n: (0, 0)),
            pl.BlockSpec((1, tile_n), lambda n: (0, n)),
        ],
        out_specs=pl.BlockSpec((cout, tile_n), lambda n: (0, n)),
        compiler_params=pltpu.CompilerParams(
            dimension_semantics=("parallel",)),
    )(feat_t, kern3, bias_col, zidx_row)


# --------------------------------------------------------------------------
# Stage 2: duplicate-summing scatter into the dense BEV grid (one-hot matmul)
# --------------------------------------------------------------------------
def _scatter_kernel(blo_ref, bhi_ref, sf_ref, fidx_ref, out_ref, *, tile_m):
    """blo/bhi [num_m] i32 (SMEM): first/last N-block holding points of M tile m
    (bhi = -1 when the M tile is empty).  sf_ref [Cout, tile_n] f32,
    fidx_ref [1, tile_n] i32 (lane-major), out_ref [Cout, tile_m] f32
    (resident across the n axis => accumulator)."""
    m = pl.program_id(0)
    n = pl.program_id(1)

    @pl.when(n == 0)
    def _init():
        out_ref[...] = jnp.zeros_like(out_ref)

    # Points are sorted by BEV cell: only N blocks blo[m]..bhi[m] can contain
    # points of this M tile — skip everything else (no VPU / MXU work).
    @pl.when(blo_ref[m] + n <= bhi_ref[m])
    def _accumulate():
        sf = sf_ref[...]                                    # [Cout, tile_n] f32
        tn = sf.shape[1]
        # one_hot_t[j, i] = (fidx[i] == m*tile_m + j): fidx stays lane-major
        # (broadcast over sublanes), iota varies along sublanes — no relayout.
        row = jax.lax.broadcasted_iota(jnp.int32, (tile_m, tn), 0) + m * tile_m
        one_hot_t = (row == fidx_ref[...]).astype(sf.dtype)  # [tile_m, tile_n]
        # out[c, j] += sum_i sf[c, i] * one_hot_t[j, i]  (contract lane dims,
        # same MXU pattern as q @ k^T in flash attention) -> [Cout, tile_m].
        out_ref[...] += jax.lax.dot_general(
            sf, one_hot_t, (((1,), (1,)), ((), ())),
            preferred_element_type=jnp.float32)


def _scatter(sf_all, fidx_row, blo, bhi, *, tile_m, tile_n, m_pad):
    cout, n_pad = sf_all.shape
    num_m = m_pad // tile_m
    num_n = n_pad // tile_n

    def point_block_map(m, n, blo_ref, bhi_ref):
        # Walk only the active N blocks of M tile m; clamp afterwards so the
        # block index stops changing (no redundant DMA on skipped steps).
        top = jnp.maximum(bhi_ref[m], blo_ref[m])
        return (0, jnp.minimum(blo_ref[m] + n, top))

    grid_spec = pltpu.PrefetchScalarGridSpec(
        num_scalar_prefetch=2,
        grid=(num_m, num_n),
        in_specs=[
            pl.BlockSpec((cout, tile_n), point_block_map),
            pl.BlockSpec((1, tile_n), point_block_map),
        ],
        out_specs=pl.BlockSpec((cout, tile_m), lambda m, n, blo, bhi: (0, m)),
    )
    return pl.pallas_call(
        functools.partial(_scatter_kernel, tile_m=tile_m),
        grid_spec=grid_spec,
        out_shape=jax.ShapeDtypeStruct((cout, m_pad), jnp.float32),
        compiler_params=pltpu.CompilerParams(
            dimension_semantics=("parallel", "arbitrary")),
    )(blo, bhi, sf_all, fidx_row)


# --------------------------------------------------------------------------
# Wrapper
# --------------------------------------------------------------------------
def to_dense_bev(features, coords, stride, kernel, bev_shape, batch_size,
                 z_dim=1, offset=(0, 0, 0), bias=None,
                 tile_m=512, tile_n=512, compute_dtype=jnp.float32):
    """features [N, Cin], coords [N, 4] = (d0, d1, d2, batch) -> NCHW [B, Cout, H, W].

    compute_dtype=jnp.bfloat16 halves VMEM/vreg pressure for the stage-1
    operands (v6e/v7x friendly) at the cost of exact f32 parity.
    """
    N, Cin = features.shape
    n_kernels, _, Cout = kernel.shape
    bev_dims = [i for i in range(3) if i != z_dim]
    H, W = int(bev_shape[0]), int(bev_shape[1])
    M = batch_size * H * W

    # ---- index math (matches the PyTorch module) ----
    coords = coords.astype(jnp.int32)
    zidx = (coords[:, z_dim] // stride).astype(jnp.int32)        # RAW z, no offset
    off = jnp.asarray(list(offset) + [0], dtype=jnp.int32)
    c = coords - off
    b = c[:, 3]
    y = c[:, bev_dims[0]] // stride
    x = c[:, bev_dims[1]] // stride
    fidx = (b * (H * W) + y * W + x).astype(jnp.int32)           # [N]

    # ---- tiling ----
    tile_m = min(int(tile_m), _round_up(M, 128))
    tile_n = min(int(tile_n), _round_up(N, 128))
    assert tile_m % 128 == 0 and tile_n % 128 == 0
    num_m = _cdiv(M, tile_m)
    num_n = _cdiv(N, tile_n)
    m_pad = num_m * tile_m
    n_pad = num_n * tile_n

    # Out-of-range cells -> sentinel m_pad (never matches a one-hot column).
    key = jnp.where((fidx >= 0) & (fidx < M), fidx, m_pad).astype(jnp.int32)

    # ---- sort points by BEV cell so each M tile touches only a few N blocks ----
    order = jnp.argsort(key)
    feat_s = jnp.take(features, order, axis=0)
    zidx_s = jnp.take(zidx, order)
    key_s = jnp.take(key, order)

    pad = n_pad - N
    feat_p = jnp.pad(feat_s, ((0, pad), (0, 0)))
    zidx_p = jnp.pad(zidx_s, (0, pad))
    key_p = jnp.pad(key_s, (0, pad), constant_values=m_pad)      # sorted stays sorted

    # Per-M-tile point range -> first/last N block (scalar-prefetch metadata).
    bounds = jnp.arange(num_m + 1, dtype=jnp.int32) * tile_m
    pos = jnp.searchsorted(key_p, bounds, side='left').astype(jnp.int32)
    lo, hi = pos[:-1], pos[1:]
    nonempty = hi > lo
    blo = jnp.where(nonempty, lo // tile_n, 0).astype(jnp.int32)
    bhi = jnp.where(nonempty, (hi - 1) // tile_n, -1).astype(jnp.int32)

    # ---- stage 1: per-point conv (runs ONCE per point, tiled over N) ----
    feat_t = feat_p.astype(compute_dtype).T                      # [Cin, n_pad]
    kern3 = jnp.transpose(kernel.astype(compute_dtype), (0, 2, 1))  # [nk, Cout, Cin]
    if bias is None:
        bias_col = jnp.zeros((Cout, 1), jnp.float32)
    else:
        bias_col = jnp.reshape(bias.astype(jnp.float32), (Cout, 1))
    zidx_row = zidx_p[None, :]                                   # [1, n_pad]
    sf_all = _point_conv(feat_t, kern3, bias_col, zidx_row,
                         tile_n=tile_n, n_kernels=n_kernels)     # [Cout, n_pad] f32

    # ---- stage 2: scatter-add into the dense BEV (sorted + skipped) ----
    fidx_row = key_p[None, :]                                    # [1, n_pad]
    dense_t = _scatter(sf_all, fidx_row, blo, bhi,
                       tile_m=tile_m, tile_n=tile_n, m_pad=m_pad)  # [Cout, m_pad]

    # [Cout, M] -> [Cout, B, H, W] -> NCHW (minor H, W dims untouched).
    bev = dense_t[:, :M].reshape(Cout, batch_size, H, W)
    return jnp.transpose(bev, (1, 0, 2, 3))


# --------------------------------------------------------------------------
# Pure-JAX reference
# --------------------------------------------------------------------------
def _reference(features, coords, stride, kernel, bev_shape, batch_size,
               z_dim=1, bias=None):
    H, W = int(bev_shape[0]), int(bev_shape[1])
    bev_dims = [i for i in range(3) if i != z_dim]
    Cout = kernel.shape[-1]
    zidx = coords[:, z_dim] // stride
    sf = jnp.einsum('nc,nco->no', features, kernel[zidx])
    if bias is not None:
        sf = sf + bias
    fidx = (coords[:, 3] * (H * W)
            + (coords[:, bev_dims[0]] // stride) * W
            + (coords[:, bev_dims[1]] // stride))
    dense = jnp.zeros((batch_size * H * W, Cout), jnp.float32).at[fidx].add(sf)
    return jnp.transpose(dense.reshape(batch_size, H, W, Cout), (0, 3, 1, 2))


if __name__ == "__main__":
    # Module configuration (small, consistent with the __init__ shapes)
    in_channels = 8
    out_channels = 16
    shape3d = np.array([16, 4, 16])            # (d0, d1=z, d2); z_dim=1 -> n_kernels=4
    z_dim = 1
    bev_shape = shape3d[[i for i in range(3) if i != z_dim]]   # [16, 16]
    n_kernels = int(shape3d[z_dim])
    batch_size = 2
    N = 380                                    # exercises N padding + multi-block tiles
    stride = 1

    key = jax.random.PRNGKey(0)
    k_feat, k_kern, k_bias, k_c0, k_c1, k_c2, k_cb = jax.random.split(key, 7)

    # Deterministic parameter init: uniform(-std, std), std = 1/sqrt(in_channels)
    std = 1.0 / math.sqrt(in_channels)
    kernel = jax.random.uniform(k_kern, (n_kernels, in_channels, out_channels),
                                minval=-std, maxval=std, dtype=jnp.float32)
    bias = jax.random.uniform(k_bias, (1, out_channels),
                              minval=-std, maxval=std, dtype=jnp.float32)

    features = jax.random.normal(k_feat, (N, in_channels), dtype=jnp.float32)
    coords = jnp.stack([
        jax.random.randint(k_c0, (N,), 0, int(shape3d[0])),
        jax.random.randint(k_c1, (N,), 0, int(shape3d[1])),
        jax.random.randint(k_c2, (N,), 0, int(shape3d[2])),
        jax.random.randint(k_cb, (N,), 0, batch_size),
    ], axis=1).astype(jnp.int32)               # [N, 4] cols = (d0, d1, d2, batch)

    H, W = int(bev_shape[0]), int(bev_shape[1])

    # use_bias=False (module default) — small tiles to exercise the multi-tile
    # grid, the sorted skip and the data-dependent index_map.
    out = to_dense_bev(features, coords, stride, kernel, bev_shape,
                       batch_size, z_dim=z_dim, offset=(0, 0, 0),
                       tile_m=128, tile_n=128)
    out = jax.block_until_ready(out)
    ref = _reference(features, coords, stride, kernel, bev_shape, batch_size,
                     z_dim=z_dim)
    assert out.shape == (batch_size, out_channels, H, W), out.shape
    np.testing.assert_allclose(np.asarray(out), np.asarray(ref),
                               rtol=1e-5, atol=1e-5)

    # use_bias=True path — default (large) tiles, single-tile grid.
    out_b = to_dense_bev(features, coords, stride, kernel, bev_shape,
                         batch_size, z_dim=z_dim, offset=(0, 0, 0), bias=bias)
    out_b = jax.block_until_ready(out_b)
    ref_b = _reference(features, coords, stride, kernel, bev_shape, batch_size,
                       z_dim=z_dim, bias=bias)
    np.testing.assert_allclose(np.asarray(out_b), np.asarray(ref_b),
                               rtol=1e-5, atol=1e-5)

    print("KERNEL_OK")
</pallas_src>

<mosaic_0001>
module attributes {stable_mosaic.version = 11 : i64} {
  func.func @_point_conv_kernel(%arg0: i32, %arg1: memref<8x128xf32, #tpu.memory_space<vmem>>, %arg2: memref<4x16x8xf32, #tpu.memory_space<vmem>>, %arg3: memref<16x1xf32, #tpu.memory_space<vmem>>, %arg4: memref<1x128xi32, #tpu.memory_space<vmem>>, %arg5: memref<16x128xf32, #tpu.memory_space<vmem>>) attributes {dimension_semantics = [#tpu.dimension_semantics<parallel>], iteration_bounds = array<i64: 3>, scalar_prefetch = 0 : i64, scratch_operands = 0 : i64, tpu.core_type = #tpu.core_type<tc>, window_params = [{transform_indices = @transform_0, window_bounds = array<i64: 8, 128>}, {pipeline_mode = #tpu.pipeline_mode<synchronous>, transform_indices = @transform_1, window_bounds = array<i64: 4, 16, 8>}, {pipeline_mode = #tpu.pipeline_mode<synchronous>, transform_indices = @transform_2, window_bounds = array<i64: 16, 1>}, {transform_indices = @transform_3, window_bounds = array<i64: 1, 128>}, {transform_indices = @transform_4, window_bounds = array<i64: 16, 128>}]} {
    %c0 = arith.constant 0 : index
    %c0_0 = arith.constant 0 : index
    %0 = vector.load %arg1[%c0, %c0_0] : memref<8x128xf32, #tpu.memory_space<vmem>>, vector<8x128xf32>
    %c0_1 = arith.constant 0 : index
    %c0_2 = arith.constant 0 : index
    %1 = vector.load %arg4[%c0_1, %c0_2] : memref<1x128xi32, #tpu.memory_space<vmem>>, vector<1x128xi32>
    %cst = arith.constant 0.000000e+00 : f32
    %2 = vector.broadcast %cst : f32 to vector<16x128xf32>
    %c0_i32 = arith.constant 0 : i32
    %3 = vector.broadcast %c0_i32 : i32 to vector<1x128xi32>
    %4 = arith.cmpi eq, %1, %3 : vector<1x128xi32>
    %5 = arith.extui %4 : vector<1x128xi1> to vector<1x128xi32>
    %6 = arith.sitofp %5 : vector<1x128xi32> to vector<1x128xf32>
    %c0_3 = arith.constant 0 : index
    %c0_4 = arith.constant 0 : index
    %c0_5 = arith.constant 0 : index
    %7 = vector.load %arg2[%c0_3, %c0_4, %c0_5] : memref<4x16x8xf32, #tpu.memory_space<vmem>>, vector<1x16x8xf32>
    %8 = vector.shape_cast %7 : vector<1x16x8xf32> to vector<16x8xf32>
    %9 = vector.broadcast %6 : vector<1x128xf32> to vector<8x128xf32>
    %10 = arith.mulf %0, %9 : vector<8x128xf32>
    %cst_6 = arith.constant dense<0.000000e+00> : vector<16x128xf32>
    %11 = tpu.matmul %8, %10, %cst_6 {dimension_numbers = #tpu.dot_dimension_numbers<[1], [0], [0], [1], [0, 0, 1, 1], [], []>} : vector<16x8xf32>, vector<8x128xf32>, vector<16x128xf32> -> vector<16x128xf32>
    %12 = arith.addf %2, %11 : vector<16x128xf32>
    %c1_i32 = arith.constant 1 : i32
    %13 = vector.broadcast %c1_i32 : i32 to vector<1x128xi32>
    %14 = arith.cmpi eq, %1, %13 : vector<1x128xi32>
    %15 = arith.extui %14 : vector<1x128xi1> to vector<1x128xi32>
    %16 = arith.sitofp %15 : vector<1x128xi32> to vector<1x128xf32>
    %c1 = arith.constant 1 : index
    %c0_7 = arith.constant 0 : index
    %c0_8 = arith.constant 0 : index
    %17 = vector.load %arg2[%c1, %c0_7, %c0_8] : memref<4x16x8xf32, #tpu.memory_space<vmem>>, vector<1x16x8xf32>
    %18 = vector.shape_cast %17 : vector<1x16x8xf32> to vector<16x8xf32>
    %19 = vector.broadcast %16 : vector<1x128xf32> to vector<8x128xf32>
    %20 = arith.mulf %0, %19 : vector<8x128xf32>
    %cst_9 = arith.constant dense<0.000000e+00> : vector<16x128xf32>
    %21 = tpu.matmul %18, %20, %cst_9 {dimension_numbers = #tpu.dot_dimension_numbers<[1], [0], [0], [1], [0, 0, 1, 1], [], []>} : vector<16x8xf32>, vector<8x128xf32>, vector<16x128xf32> -> vector<16x128xf32>
    %22 = arith.addf %12, %21 : vector<16x128xf32>
    %c2_i32 = arith.constant 2 : i32
    %23 = vector.broadcast %c2_i32 : i32 to vector<1x128xi32>
    %24 = arith.cmpi eq, %1, %23 : vector<1x128xi32>
    %25 = arith.extui %24 : vector<1x128xi1> to vector<1x128xi32>
    %26 = arith.sitofp %25 : vector<1x128xi32> to vector<1x128xf32>
    %c2 = arith.constant 2 : index
    %c0_10 = arith.constant 0 : index
    %c0_11 = arith.constant 0 : index
    %27 = vector.load %arg2[%c2, %c0_10, %c0_11] : memref<4x16x8xf32, #tpu.memory_space<vmem>>, vector<1x16x8xf32>
    %28 = vector.shape_cast %27 : vector<1x16x8xf32> to vector<16x8xf32>
    %29 = vector.broadcast %26 : vector<1x128xf32> to vector<8x128xf32>
    %30 = arith.mulf %0, %29 : vector<8x128xf32>
    %cst_12 = arith.constant dense<0.000000e+00> : vector<16x128xf32>
    %31 = tpu.matmul %28, %30, %cst_12 {dimension_numbers = #tpu.dot_dimension_numbers<[1], [0], [0], [1], [0, 0, 1, 1], [], []>} : vector<16x8xf32>, vector<8x128xf32>, vector<16x128xf32> -> vector<16x128xf32>
    %32 = arith.addf %22, %31 : vector<16x128xf32>
    %c3_i32 = arith.constant 3 : i32
    %33 = vector.broadcast %c3_i32 : i32 to vector<1x128xi32>
    %34 = arith.cmpi eq, %1, %33 : vector<1x128xi32>
    %35 = arith.extui %34 : vector<1x128xi1> to vector<1x128xi32>
    %36 = arith.sitofp %35 : vector<1x128xi32> to vector<1x128xf32>
    %c3 = arith.constant 3 : index
    %c0_13 = arith.constant 0 : index
    %c0_14 = arith.constant 0 : index
    %37 = vector.load %arg2[%c3, %c0_13, %c0_14] : memref<4x16x8xf32, #tpu.memory_space<vmem>>, vector<1x16x8xf32>
    %38 = vector.shape_cast %37 : vector<1x16x8xf32> to vector<16x8xf32>
    %39 = vector.broadcast %36 : vector<1x128xf32> to vector<8x128xf32>
    %40 = arith.mulf %0, %39 : vector<8x128xf32>
    %cst_15 = arith.constant dense<0.000000e+00> : vector<16x128xf32>
    %41 = tpu.matmul %38, %40, %cst_15 {dimension_numbers = #tpu.dot_dimension_numbers<[1], [0], [0], [1], [0, 0, 1, 1], [], []>} : vector<16x8xf32>, vector<8x128xf32>, vector<16x128xf32> -> vector<16x128xf32>
    %42 = arith.addf %32, %41 : vector<16x128xf32>
    %c0_16 = arith.constant 0 : index
    %c0_17 = arith.constant 0 : index
    %43 = vector.load %arg3[%c0_16, %c0_17] : memref<16x1xf32, #tpu.memory_space<vmem>>, vector<16x1xf32>
    %44 = vector.broadcast %43 : vector<16x1xf32> to vector<16x128xf32>
    %45 = arith.addf %42, %44 : vector<16x128xf32>
    %c0_18 = arith.constant 0 : index
    %c0_19 = arith.constant 0 : index
    %46 = vector.load %arg5[%c0_18, %c0_19] : memref<16x128xf32, #tpu.memory_space<vmem>>, vector<16x128xf32>
    tpu.vector_store %arg5[%c0_18, %c0_19], %45 {strides = array<i32>} : memref<16x128xf32, #tpu.memory_space<vmem>>, vector<16x128xf32>,
    return
  }
  func.func @transform_0(%arg0: i32) -> (i32, i32) {
    %c0_i32 = arith.constant 0 : i32
    %c0_i32_0 = arith.constant 0 : i32
    return %c0_i32, %arg0 : i32, i32
  }
  func.func @transform_1(%arg0: i32) -> (i32, i32, i32) {
    %c0_i32 = arith.constant 0 : i32
    %c0_i32_0 = arith.constant 0 : i32
    %c0_i32_1 = arith.constant 0 : i32
    %c0_i32_2 = arith.constant 0 : i32
    return %c0_i32, %c0_i32_0, %c0_i32_1 : i32, i32, i32
  }
  func.func @transform_2(%arg0: i32) -> (i32, i32) {
    %c0_i32 = arith.constant 0 : i32
    %c0_i32_0 = arith.constant 0 : i32
    %c0_i32_1 = arith.constant 0 : i32
    return %c0_i32, %c0_i32_0 : i32, i32
  }
  func.func @transform_3(%arg0: i32) -> (i32, i32) {
    %c0_i32 = arith.constant 0 : i32
    %c0_i32_0 = arith.constant 0 : i32
    return %c0_i32, %arg0 : i32, i32
  }
  func.func @transform_4(%arg0: i32) -> (i32, i32) {
    %c0_i32 = arith.constant 0 : i32
    %c0_i32_0 = arith.constant 0 : i32
    return %c0_i32, %arg0 : i32, i32
  }
}

</mosaic_0001>

<bundles_post_ra>
// kernel: tpu_custom_call.1
= control target key start
LH: loop header
LB: loop body
LE: loop exit
PB: predicated region body
PF: predicated region fallthrough
CT: control target
= control target key end

     0   :  { %9 = vsyncpa [#allocation3], 0  ;;  %s1039_s0 = inlined_call_operand.vmem [shape: f32[8,384], index: 0, kind: input, shape index: {}]   ;;  %s1040_s1 = inlined_call_operand.vmem [shape: f32[4,16,8], index: 1, kind: input, shape index: {}]   ;;  %s1041_s2 = inlined_call_operand.vmem [shape: f32[16,1], index: 2, kind: input, shape index: {}]   ;;  %s1042_s3 = inlined_call_operand.vmem [shape: s32[1,384], index: 3, kind: input, shape index: {}]   ;;  %s1043_s4 = inlined_call_operand.hbm [shape: f32[16,384], index: 4, kind: output, shape index: {}]  }
   0x1   :  { %11 = vsyncpa [#allocation3 + $0x1], 0  ;;  %s895_s15 = smov 0   ;;  %s897_s16 = smov 0  }
   0x2   :  { %s899_s17 = smov 0   ;;  %s901_s18 = smov 0  }
   0x3 LB: > { %s916_s19 = sadd.s32 4294967295, %s862_s18   ;;  %s689_s20 = sadd.s32 4294967294, %s862_s18   ;;  %s862_s18 = sphi %s901_s18, %s1049_s18   ;;  %s858_s17 = sphi %s899_s17, %s1048_s17   ;;  %s854_s16 = sphi %s897_s16, %s1047_s16   ;;  %s850_s15 = sphi %s895_s15, %s1046_s15  }
   0x4   : > { %s920_s21 = sadd.s32 1, %s862_s18   ;;  %s118_s22 = sadd.s32 1, %s858_s17 }
   0x5   : > { %s115_s23 = ssub.s32 %s862_s18, %s920_s21  ;;  %p128_p0 = scmp.ne.s32.totalorder %s858_s17, %s854_s16 }
   0x6   : > { %p116_p1 = scmp.eq.s32.totalorder %s115_s23, 0  ;;  %p129_p2 = scmp.eq.s32.totalorder %s916_s19, 2 }
   0x7   : > { %p134_p3 = scmp.ne.s32.totalorder %s854_s16, %s850_s15  ;;  %p135_p4 = scmp.eq.s32.totalorder %s689_s20, 2 }
   0x8   : > { %s931_s24 = scalar_select %p116_p1, %s858_s17, %s118_s22  }
   0x9   : > { %p933_p5 = por %p129_p2, %p128_p0  ;;  %p937_p6 = por %p135_p4, %p134_p3 }
   0xa   : > { %p692_p7 = scmp.ge.s32.totalorder %s862_s18, 1  ;;  %p172_p8 = scmp.lt.s32.totalorder %s862_s18, 4 }
   0xc   : > { %p173_p9 = pnand %p692_p7, %p172_p8 }
   0xd   : > { %p200_p10 = scmp.lt.s32.totalorder (!%p173_p9), %s916_s19, 2  ;;  %v215_v0 = vlaneseq (!%p173_p9)  ;;  %v697_v1 = vld [vmem:[%s1040_s1 + $0x10] sm:$0xff] (!%p173_p9)  ;;  %vm234_vm0 = vcmask (!%p173_p9), 64512   ;;  %v704_v2 = vld [vmem:[%s1040_s1 + $0x20] sm:$0xff] (!%p173_p9)  ;;  %v864_v4 = vmov (!%p173_p9), 0   ;;  %v590_v7 = vld [vmem:[%s1041_s2 + $0x8] sm:$0xff] (!%p173_p9) }
   0xe   : > { %176 = sbr.rel (%p173_p9) target bundleno = 275 (0x113), region = 36  ;;  %731 = vmatprep.mubr.msk.f32.mxu1 (!%p173_p9), %vm234_vm0, %v697_v1  ;;  %741 = vmatprep.mubr.msk.f32.mxu0 (!%p173_p9), %vm234_vm0, %v704_v2  ;;  %v589_v5 = vld [vmem:[%s1041_s2] sm:$0xff] (!%p173_p9)  ;;  %v865_v10 = vmov (!%p173_p9), 0.0   ;;  %v698_v22 = vld [vmem:[%s1040_s1 + $0x18] sm:$0xff] (!%p173_p9)  ;;  %v705_v24 = vld [vmem:[%s1040_s1 + $0x28] sm:$0xff] (!%p173_p9)  ;;  %s197_s12 = sand.u32 (!%p173_p9), 1, %s854_s16  }
   0xf   : > { %v216_v3 = vshrl.u32 (!%p173_p9), %v215_v0, 7  ;;  %799 = vset.pattern.permute.xlu0 (!%p173_p9), %v864_v4  ;;  %v212_v25 = vld [vmem:[%s1040_s1] sm:$0xff] (!%p173_p9)  ;;  %v709_v26 = vld [vmem:[%s1040_s1 + $0x30] sm:$0xff] (!%p173_p9)  ;;  %v213_v27 = vld [vmem:[%s1040_s1 + $0x8] sm:$0xff] (!%p173_p9)  ;;  %s693_s13 = sshll.u32 (!%p173_p9), %s197_s12, 4  ;;  %s998_s29 = scalar_lea.sflag (!%p173_p9), [#allocation3], %s197_s12 }
  0x10   : > { %593 = vperm.xlu0 (!%p173_p9), %799, %v589_v5   ;;  %v710_v28 = vld [vmem:[%s1040_s1 + $0x38] sm:$0xff] (!%p173_p9)  ;;  %s199_s14 = scalar_lea.vmem (!%p173_p9), [#allocation2], %s693_s13  ;;  %s866_s30 = smov (!%p173_p9), [#allocation2]  }
  0x11   : > { %v217_v6 = vsub.s32 (!%p173_p9), 0, %v216_v3  ;;  %s618_s20 = sshll.u32 (!%p173_p9), %s199_s14, 4  ;;  %s991_s20 = int_to_ptr.vmem [resolvable:$true] %s618_s20 }
  0x14   : > { %598 = vperm.xlu0 (!%p173_p9), %799, %v590_v7  }
  0x15   : > { %s201_s5 = scalar_select %p200_p10, %s916_s19, 2 }
  0x17   : > { %s694_s8 = sshll.u32 %s201_s5, 3  ;;  %s206_s11 = scalar_lea.vmem %s1042_s3, %s201_s5 }
  0x18   : > { %s203_s22 = scalar_lea.vmem %s1039_s0, %s694_s8  ;;  %v208_v8 = vld [vmem:[%s206_s11] sm:$0x1]  ;;  %s804_s5 = sshll.u32 %s866_s30, 4  ;;  %s805_s5 = int_to_ptr.vmem [resolvable:$false] %s804_s5 }
  0x19   : > { %vm221_vm1 = vcmp.eq.s32.totalorder %v208_v8, 1  ;;  %vm397_vm2 = vcmp.eq.s32.totalorder %v208_v8, 2  ;;  %vm209_vm3 = vcmp.eq.s32.totalorder %v208_v8, 0  ;;  %vm493_vm4 = vcmp.eq.s32.totalorder %v208_v8, 3  ;;  %v207_v9 = vld [vmem:[%s203_s22] sm:$0xff]  ;;  %s714_s22 = sshll.u32 %s916_s19, 7  ;;  %p807_p0 = scmp.lt.s32.totalorder %s991_s20, %s805_s5 }
  0x1a   : > { %v696_v11 = vsel %vm221_vm1, 1.0, %v865_v10  ;;  %v703_v12 = vsel %vm397_vm2, 1.0, %v865_v10  ;;  %v695_v13 = vsel %vm209_vm3, 1.0, %v865_v10  ;;  %v708_v14 = vsel %vm493_vm4, 1.0, %v865_v10  ;;  %s996_s28 = scalar_lea.hbm %s1043_s4, %s714_s22  ;;  %s800_s19 = scalar_lea.vmem %s991_s20, 256 }
  0x1b   : > { %v231_v15 = vrot.slane %v696_v11, %v217_v6  ;;  %v407_v16 = vrot.slane %v703_v12, %v217_v6  ;;  %v218_v17 = vrot.slane %v695_v13, %v217_v6  ;;  %v503_v18 = vrot.slane %v708_v14, %v217_v6  ;;  %p801_p11 = scmp.ne.s32.totalorder %s991_s20, %s800_s19  ;;  %s806_s6 = scalar_lea.vmem %s805_s5, 512 }
  0x1c   : > { %p808_p1 = scmp.lt.s32.totalorder %s806_s6, %s800_s19 }
  0x1d   : > { %v233_v19 = vmul.f32 %v231_v15, %v207_v9  ;;  %v409_v20 = vmul.f32 %v407_v16, %v207_v9  ;;  %v220_v21 = vmul.f32 %v218_v17, %v207_v9  ;;  %v505_v23 = vmul.f32 %v503_v18, %v207_v9  ;;  %p802_p12 = pnand %p801_p11, %p933_p5 }
  0x1e   : > { %p809_p2 = por %p808_p1, %p807_p0 }
  0x1f   : > { %729 = vmatprep.subr.mxu1 %v233_v19  ;;  %739 = vmatprep.subr.mxu0 %v409_v20  ;;  %p803_p13 = pneg %p802_p12 }
  0x20   : > { %730 = vmatpush3.msra.mxu1 %v233_v19  ;;  %740 = vmatpush3.msra.mxu0 %v409_v20 }
  0x21   : > { %732 = vmatmul.mubr.msk.f32.vlgmr.msra.gmra.mrb[0].mxu1 %vm234_vm0, %v698_v22  ;;  %734 = vmatprep.subr.mxu1 %v220_v21  ;;  %p810_p3 = pnand %p809_p2, %p803_p13 }
  0x22   : > { %742 = vmatmul.mubr.msk.f32.vlgmr.msra.gmra.mrb[0].mxu0 %vm234_vm0, %v705_v24  ;;  %744 = vmatprep.subr.mxu0 %v505_v23 }
  0x23   : > { %735 = vmatpush3.msra.mxu1 %v220_v21  ;;  %745 = vmatpush3.msra.mxu0 %v505_v23 }
  0x24   : > { %736 = vmatprep.mubr.msk.f32.mxu1 %vm234_vm0, %v212_v25  ;;  %746 = vmatprep.mubr.msk.f32.mxu0 %vm234_vm0, %v709_v26 }
  0x29   : > { %737 = vmatmul.mubr.msk.f32.vlgmr.msra.gmra.mrb[0].mxu1 %vm234_vm0, %v213_v27 }
  0x2a   : > { %747 = vmatmul.mubr.msk.f32.vlgmr.msra.gmra.mrb[0].mxu0 %vm234_vm0, %v710_v28 }
  0x8f   : > { %v594_v29 = vpop.permute.xlu0 %593 }
  0x93   : > { %v599_v35 = vpop.permute.xlu0 %598 }
  0xfc   : > { %v738_v30 = vpop.f32.mrb[0].mxu1 }
  0xfd   : > { %v748_v31 = vpop.f32.mrb[0].mxu0  ;;  %v388_v32 = vpop.f32.mrb[1].mxu1 }
  0xfe   : > { %v749_v33 = vadd.f32 %v748_v31, %v738_v30  ;;  %v578_v34 = vpop.f32.mrb[1].mxu0 }
  0xff   : > { %v750_v36 = vadd.f32 %v578_v34, %v388_v32 }
 0x100   : > { %v602_v37 = vadd.f32 %v749_v33, %v599_v35 }
 0x101   : > { %v601_v38 = vadd.f32 %v750_v36, %v594_v29 }
 0x102   : > { %604 = vst [vmem:[%s199_s14 + $0x8] sm:$0xff] %v602_v37 }
 0x103   : > { %603 = vst [vmem:[%s199_s14] sm:$0xff] %v601_v38 }
 0x104   : > { %813 = shalt.err (!%p810_p3)
}
 0x105   : > { %s814_s7 = scalar_lea.hbm %s996_s28, 256  ;;  %s818_s10 = scalar_lea.hbm %s1043_s4, 768 }
 0x106   : > { %p815_p4 = scmp.ne.s32.totalorder %s996_s28, %s814_s7  ;;  %p819_p9 = scmp.lt.u32.totalorder %s996_s28, %s1043_s4 }
 0x107   : > { %p820_p10 = scmp.lt.u32.totalorder %s818_s10, %s814_s7  ;;  %p822_p12 = scmp.lt.u32.totalorder %s814_s7, %s996_s28 }
 0x108   : > { %p816_p7 = pnand %p815_p4, %p933_p5 }
 0x109   : > { %p821_p11 = por %p820_p10, %p819_p9 }
 0x10a   : > { %p817_p8 = pneg %p816_p7 }
 0x10b   : > { %p823_p13 = por %p822_p12, %p821_p11 }
 0x10d   : > { %p824_p0 = pnand %p823_p13, %p817_p8 }
 0x10f   : > { %827 = shalt.err (!%p824_p0)
}
 0x110   : > { %s867_s13 = smov 128   ;;  %s868_s14 = smov 384  }
 0x111   : > { %s869_s22 = smov 8  }
 0x112   : > { %755 = dma.vmem_to_hbm [thread:$0]  (%p933_p5), %s991_s20, 256, %s996_s28, %s998_s29, %s867_s13, %s868_s14, %s869_s22  }
 0x113 PF: > { %p761_p1 = scmp.ge.s32.totalorder %s862_s18, 2  ;;  %s633_s23 = sand.u32 1, %s850_s15  }
 0x114   : > { %s634_s27 = scalar_lea.sflag [#allocation3], %s633_s23 }
 0x115   : > { %p758_p2 = pnand %p761_p1, %p937_p6 }
 0x117   : > { %845 = dma.done.wait (!%p758_p2), %s634_s27, 256  }
 0x118   : > { %847 = vsyncadd (!%p758_p2), %s634_s27, 4294967040  ;;  %p14_p3 = scmp.ge.s32.totalorder %s920_s21, 5   ;;  %s1046_s15 = smov %s854_s16 }
 0x119   : > { %s1047_s16 = smov %s858_s17  ;;  %s1048_s17 = smov %s931_s24 }
 0x11a   : > { %s1049_s18 = smov %s920_s21  ;;  %16 = sbr.rel (!%p14_p3) target bundleno = 3 (0x3), region = 77 }
 0x121   :  { %639 = vsyncpa [#allocation3], 1 }
 0x122   :  { %641 = vsyncpa [#allocation3 + $0x1], 1 }

</bundles_post_ra>
